<compile_context>
chip_gen: v5e
topology: v5e:2x2
jax: 0.10.0
libtpu: 0.0.40
codegen_flags: <defaults>
</compile_context>

<pallas_src>
import jax
import jax.numpy as jnp
from jax.experimental import pallas as pl
from jax.experimental.pallas import tpu as pltpu


def _round_up(n, m):
    return ((n + m - 1) // m) * m


def mlp_kernel(x_ref, w1_ref, b1_ref, w2_ref, b2_ref, w3_ref, b3_ref, o_ref):
    # fc1 + ReLU: cast the streamed f32 tile to bf16 in-kernel (hidden under
    # the HBM DMA), bf16 x bf16 MXU matmul, f32 accumulation.
    x = x_ref[...].astype(jnp.bfloat16)
    h1 = jnp.dot(x, w1_ref[...], preferred_element_type=jnp.float32)
    h1 = jnp.maximum(h1 + b1_ref[...], 0.0)
    # fc2 + ReLU: keep native bf16 MXU issue (cast activations, not weights).
    h2 = jnp.dot(h1.astype(jnp.bfloat16), w2_ref[...],
                 preferred_element_type=jnp.float32)
    h2 = jnp.maximum(h2 + b2_ref[...], 0.0)
    # fc3 (logits, lane-padded to 128 columns), bf16 writeback.
    logits = jnp.dot(h2.astype(jnp.bfloat16), w3_ref[...],
                     preferred_element_type=jnp.float32)
    o_ref[...] = (logits + b3_ref[...]).astype(o_ref.dtype)


def simple_mlp_forward(x, params, *, tb_max=2048):
    """x: (B, ...) -> logits (B, nb_classes) float32."""
    w1, b1, w2, b2, w3, b3 = params
    B = x.shape[0]
    in_features = w1.shape[0]
    nb_classes = w3.shape[1]
    h1_dim, h2_dim = w1.shape[1], w2.shape[1]

    # nn.Flatten(): metadata-only reshape of contiguous input; keep native f32
    # so no separate cast/pad pass over x hits HBM.
    x2d = x.reshape(B, -1)
    assert x2d.shape[1] == in_features

    # Lane-dense output: pad classes to a multiple of 128 with zero columns
    # (padded weight/bias columns are zero -> padded logits are inert).
    n_pad = _round_up(max(nb_classes, 128), 128)
    w3p = jnp.zeros((w3.shape[0], n_pad), w3.dtype).at[:, :nb_classes].set(w3)
    b3p = jnp.zeros((1, n_pad), b3.dtype).at[:, :nb_classes].set(b3)

    # Batch tile: multiple of 16 (bf16 sublane tile for the output block),
    # capped so the grid has >=2 steps when B is large (v7x megacore), and by
    # tb_max so buffers stay well inside VMEM.
    TB = max(16, min(_round_up(tb_max, 16), _round_up(pl.cdiv(B, 2), 16)))

    # Ragged last block is handled by Pallas masked writes; only a degenerate
    # tiny batch (B < 16) gets a handful of padded rows so the block never
    # exceeds the array extent.  Cost is negligible (< 16 rows).
    Bp = B
    if B < TB:
        Bp = TB
        x2d = jnp.pad(x2d, ((0, Bp - B), (0, 0)))

    grid = (pl.cdiv(Bp, TB),)

    # Explicit scoped-VMEM limit: double-buffered x + out tiles, weights,
    # f32 intermediates, plus headroom.  Clamped to [32 MiB, 64 MiB] so it is
    # safe on v5e/v6e (128 MiB physical) and v7x (64 MiB per TC).
    x_bytes = TB * in_features * x2d.dtype.itemsize
    out_bytes = TB * n_pad * 2
    w_bytes = (w1.size + w2.size + w3p.size) * 2 + (b1.size + b2.size + b3p.size) * 4
    inter_bytes = TB * (h1_dim + h2_dim + n_pad) * 4
    vmem_limit = 2 * (x_bytes + out_bytes) + 2 * w_bytes + inter_bytes + (4 << 20)
    vmem_limit = int(min(max(vmem_limit, 32 << 20), 64 << 20))

    cost = pl.CostEstimate(
        flops=2 * Bp * (in_features * h1_dim + h1_dim * h2_dim + h2_dim * n_pad),
        transcendentals=0,
        bytes_accessed=Bp * (in_features * x2d.dtype.itemsize + n_pad * 2) + w_bytes,
    )

    const = lambda shape: pl.BlockSpec(shape, lambda i: (0,) * len(shape))

    out = pl.pallas_call(
        mlp_kernel,
        out_shape=jax.ShapeDtypeStruct((Bp, n_pad), jnp.bfloat16),
        grid=grid,
        in_specs=[
            pl.BlockSpec((TB, in_features), lambda i: (i, 0)),   # streamed x tile
            const(w1.shape), const(b1.shape),                    # VMEM-resident params
            const(w2.shape), const(b2.shape),
            const(w3p.shape), const(b3p.shape),
        ],
        out_specs=pl.BlockSpec((TB, n_pad), lambda i: (i, 0)),
        compiler_params=pltpu.CompilerParams(
            dimension_semantics=("parallel",),
            vmem_limit_bytes=vmem_limit),
        cost_estimate=cost,
    )(
        x2d,
        w1.astype(jnp.bfloat16), b1.astype(jnp.float32),
        w2.astype(jnp.bfloat16), b2.astype(jnp.float32),
        w3p.astype(jnp.bfloat16), b3p.astype(jnp.float32),
    )
    # Slice off padded rows/columns and upcast for downstream f32 loss math.
    return out[:B, :nb_classes].astype(jnp.float32)


def init_params(key, in_features=28 * 28, nb_classes=10):
    """Deterministic PyTorch-style init: U(-1/sqrt(fan_in), 1/sqrt(fan_in))."""
    dims = [(in_features, 50), (50, 30), (30, nb_classes)]
    params = []
    for (fan_in, fan_out) in dims:
        key, kw, kb = jax.random.split(key, 3)
        bound = 1.0 / (fan_in ** 0.5)
        w = jax.random.uniform(kw, (fan_in, fan_out), jnp.float32, -bound, bound)
        b = jax.random.uniform(kb, (1, fan_out), jnp.float32, -bound, bound)
        params += [w, b]
    return tuple(params)


def _reference(x, params):
    """Plain-JAX reference with the same bf16-rounded inputs/weights, f32 math."""
    w1, b1, w2, b2, w3, b3 = params
    f = lambda a: a.astype(jnp.bfloat16).astype(jnp.float32)
    xf = f(x.reshape(x.shape[0], -1))
    h = jnp.maximum(xf @ f(w1) + b1, 0.0)
    h = jnp.maximum(f(h) @ f(w2) + b2, 0.0)
    return f(h) @ f(w3) + b3


if __name__ == "__main__":
    key = jax.random.PRNGKey(0)
    key, kx = jax.random.split(key)

    # MNIST-like small input: batch=2, NCHW (2, 1, 28, 28) -> 784 features.
    params = init_params(key, in_features=28 * 28, nb_classes=10)
    x = jax.random.normal(kx, (2, 1, 28, 28), dtype=jnp.float32)

    logits = jax.block_until_ready(simple_mlp_forward(x, params))
    assert logits.shape == (2, 10)
    ref = _reference(x, params)
    assert jnp.allclose(logits, ref, atol=5e-2, rtol=5e-2), (
        float(jnp.max(jnp.abs(logits - ref))))

    # Larger, non-multiple batch to exercise multi-step grid + ragged last block.
    key, kx2 = jax.random.split(key)
    x2 = jax.random.normal(kx2, (300, 1, 28, 28), dtype=jnp.float32)
    logits2 = jax.block_until_ready(simple_mlp_forward(x2, params, tb_max=128))
    assert logits2.shape == (300, 10)
    ref2 = _reference(x2, params)
    assert jnp.allclose(logits2, ref2, atol=5e-2, rtol=5e-2), (
        float(jnp.max(jnp.abs(logits2 - ref2))))

    print("KERNEL_OK")
</pallas_src>

<mosaic_0001>
module attributes {stable_mosaic.version = 11 : i64} {
  func.func @mlp_kernel(%arg0: i32, %arg1: memref<16x784xf32, #tpu.memory_space<vmem>>, %arg2: memref<784x50xbf16, #tpu.memory_space<vmem>>, %arg3: memref<1x50xf32, #tpu.memory_space<vmem>>, %arg4: memref<50x30xbf16, #tpu.memory_space<vmem>>, %arg5: memref<1x30xf32, #tpu.memory_space<vmem>>, %arg6: memref<30x128xbf16, #tpu.memory_space<vmem>>, %arg7: memref<1x128xf32, #tpu.memory_space<vmem>>, %arg8: memref<16x128xbf16, #tpu.memory_space<vmem>>) attributes {dimension_semantics = [#tpu.dimension_semantics<parallel>], iteration_bounds = array<i64: 1>, scalar_prefetch = 0 : i64, scratch_operands = 0 : i64, tpu.core_type = #tpu.core_type<tc>, window_params = [{transform_indices = @transform_0, window_bounds = array<i64: 16, 784>}, {pipeline_mode = #tpu.pipeline_mode<synchronous>, transform_indices = @transform_1, window_bounds = array<i64: 784, 50>}, {pipeline_mode = #tpu.pipeline_mode<synchronous>, transform_indices = @transform_2, window_bounds = array<i64: 1, 50>}, {pipeline_mode = #tpu.pipeline_mode<synchronous>, transform_indices = @transform_3, window_bounds = array<i64: 50, 30>}, {pipeline_mode = #tpu.pipeline_mode<synchronous>, transform_indices = @transform_4, window_bounds = array<i64: 1, 30>}, {pipeline_mode = #tpu.pipeline_mode<synchronous>, transform_indices = @transform_5, window_bounds = array<i64: 30, 128>}, {pipeline_mode = #tpu.pipeline_mode<synchronous>, transform_indices = @transform_6, window_bounds = array<i64: 1, 128>}, {transform_indices = @transform_7, window_bounds = array<i64: 16, 128>}]} {
    %c0 = arith.constant 0 : index
    %c0_0 = arith.constant 0 : index
    %0 = vector.load %arg1[%c0, %c0_0] : memref<16x784xf32, #tpu.memory_space<vmem>>, vector<16x784xf32>
    %1 = arith.truncf %0 : vector<16x784xf32> to vector<16x784xbf16>
    %c0_1 = arith.constant 0 : index
    %c0_2 = arith.constant 0 : index
    %2 = vector.load %arg2[%c0_1, %c0_2] : memref<784x50xbf16, #tpu.memory_space<vmem>>, vector<784x50xbf16>
    %cst = arith.constant dense<0.000000e+00> : vector<16x50xf32>
    %3 = tpu.matmul %1, %2, %cst {dimension_numbers = #tpu.dot_dimension_numbers<[1], [0], [0], [1], [0, 0, 1, 1], [], []>} : vector<16x784xbf16>, vector<784x50xbf16>, vector<16x50xf32> -> vector<16x50xf32>
    %c0_3 = arith.constant 0 : index
    %c0_4 = arith.constant 0 : index
    %4 = vector.load %arg3[%c0_3, %c0_4] : memref<1x50xf32, #tpu.memory_space<vmem>>, vector<1x50xf32>
    %5 = vector.broadcast %4 : vector<1x50xf32> to vector<16x50xf32>
    %6 = arith.addf %3, %5 : vector<16x50xf32>
    %cst_5 = arith.constant 0.000000e+00 : f32
    %7 = vector.broadcast %cst_5 : f32 to vector<16x50xf32>
    %8 = arith.maximumf %6, %7 : vector<16x50xf32>
    %9 = arith.truncf %8 : vector<16x50xf32> to vector<16x50xbf16>
    %c0_6 = arith.constant 0 : index
    %c0_7 = arith.constant 0 : index
    %10 = vector.load %arg4[%c0_6, %c0_7] : memref<50x30xbf16, #tpu.memory_space<vmem>>, vector<50x30xbf16>
    %cst_8 = arith.constant dense<0.000000e+00> : vector<16x30xf32>
    %11 = tpu.matmul %9, %10, %cst_8 {dimension_numbers = #tpu.dot_dimension_numbers<[1], [0], [0], [1], [0, 0, 1, 1], [], []>} : vector<16x50xbf16>, vector<50x30xbf16>, vector<16x30xf32> -> vector<16x30xf32>
    %c0_9 = arith.constant 0 : index
    %c0_10 = arith.constant 0 : index
    %12 = vector.load %arg5[%c0_9, %c0_10] : memref<1x30xf32, #tpu.memory_space<vmem>>, vector<1x30xf32>
    %13 = vector.broadcast %12 : vector<1x30xf32> to vector<16x30xf32>
    %14 = arith.addf %11, %13 : vector<16x30xf32>
    %cst_11 = arith.constant 0.000000e+00 : f32
    %15 = vector.broadcast %cst_11 : f32 to vector<16x30xf32>
    %16 = arith.maximumf %14, %15 : vector<16x30xf32>
    %17 = arith.truncf %16 : vector<16x30xf32> to vector<16x30xbf16>
    %c0_12 = arith.constant 0 : index
    %c0_13 = arith.constant 0 : index
    %18 = vector.load %arg6[%c0_12, %c0_13] : memref<30x128xbf16, #tpu.memory_space<vmem>>, vector<30x128xbf16>
    %cst_14 = arith.constant dense<0.000000e+00> : vector<16x128xf32>
    %19 = tpu.matmul %17, %18, %cst_14 {dimension_numbers = #tpu.dot_dimension_numbers<[1], [0], [0], [1], [0, 0, 1, 1], [], []>} : vector<16x30xbf16>, vector<30x128xbf16>, vector<16x128xf32> -> vector<16x128xf32>
    %c0_15 = arith.constant 0 : index
    %c0_16 = arith.constant 0 : index
    %20 = vector.load %arg7[%c0_15, %c0_16] : memref<1x128xf32, #tpu.memory_space<vmem>>, vector<1x128xf32>
    %21 = vector.broadcast %20 : vector<1x128xf32> to vector<16x128xf32>
    %22 = arith.addf %19, %21 : vector<16x128xf32>
    %23 = arith.truncf %22 : vector<16x128xf32> to vector<16x128xbf16>
    %c0_17 = arith.constant 0 : index
    %c0_18 = arith.constant 0 : index
    %24 = vector.load %arg8[%c0_17, %c0_18] : memref<16x128xbf16, #tpu.memory_space<vmem>>, vector<16x128xbf16>
    tpu.vector_store %arg8[%c0_17, %c0_18], %23 {strides = array<i32>} : memref<16x128xbf16, #tpu.memory_space<vmem>>, vector<16x128xbf16>,
    return
  }
  func.func @transform_0(%arg0: i32) -> (i32, i32) {
    %c0_i32 = arith.constant 0 : i32
    %c0_i32_0 = arith.constant 0 : i32
    return %arg0, %c0_i32 : i32, i32
  }
  func.func @transform_1(%arg0: i32) -> (i32, i32) {
    %c0_i32 = arith.constant 0 : i32
    %c0_i32_0 = arith.constant 0 : i32
    %c0_i32_1 = arith.constant 0 : i32
    return %c0_i32, %c0_i32_0 : i32, i32
  }
  func.func @transform_2(%arg0: i32) -> (i32, i32) {
    %c0_i32 = arith.constant 0 : i32
    %c0_i32_0 = arith.constant 0 : i32
    %c0_i32_1 = arith.constant 0 : i32
    return %c0_i32, %c0_i32_0 : i32, i32
  }
  func.func @transform_3(%arg0: i32) -> (i32, i32) {
    %c0_i32 = arith.constant 0 : i32
    %c0_i32_0 = arith.constant 0 : i32
    %c0_i32_1 = arith.constant 0 : i32
    return %c0_i32, %c0_i32_0 : i32, i32
  }
  func.func @transform_4(%arg0: i32) -> (i32, i32) {
    %c0_i32 = arith.constant 0 : i32
    %c0_i32_0 = arith.constant 0 : i32
    %c0_i32_1 = arith.constant 0 : i32
    return %c0_i32, %c0_i32_0 : i32, i32
  }
  func.func @transform_5(%arg0: i32) -> (i32, i32) {
    %c0_i32 = arith.constant 0 : i32
    %c0_i32_0 = arith.constant 0 : i32
    %c0_i32_1 = arith.constant 0 : i32
    return %c0_i32, %c0_i32_0 : i32, i32
  }
  func.func @transform_6(%arg0: i32) -> (i32, i32) {
    %c0_i32 = arith.constant 0 : i32
    %c0_i32_0 = arith.constant 0 : i32
    %c0_i32_1 = arith.constant 0 : i32
    return %c0_i32, %c0_i32_0 : i32, i32
  }
  func.func @transform_7(%arg0: i32) -> (i32, i32) {
    %c0_i32 = arith.constant 0 : i32
    %c0_i32_0 = arith.constant 0 : i32
    return %arg0, %c0_i32 : i32, i32
  }
}

</mosaic_0001>

<bundles_post_ra>
// kernel: tpu_custom_call.1
= control target key start
LH: loop header
LB: loop body
LE: loop exit
PB: predicated region body
PF: predicated region fallthrough
CT: control target
= control target key end

     0   :  { %s1245_s0 = inlined_call_operand.vmem [shape: f32[16,784], index: 0, kind: input, shape index: {}]   ;;  %s1246_s1 = inlined_call_operand.vmem [shape: bf16[784,50], index: 1, kind: input, shape index: {}]   ;;  %s1247_s2 = inlined_call_operand.vmem [shape: f32[1,50], index: 2, kind: input, shape index: {}]   ;;  %s1248_s3 = inlined_call_operand.vmem [shape: bf16[50,30], index: 3, kind: input, shape index: {}]   ;;  %s1249_s4 = inlined_call_operand.vmem [shape: f32[1,30], index: 4, kind: input, shape index: {}]   ;;  %s1250_s5 = inlined_call_operand.vmem [shape: bf16[30,128], index: 5, kind: input, shape index: {}]   ;;  %s1251_s6 = inlined_call_operand.vmem [shape: f32[1,128], index: 6, kind: input, shape index: {}]   ;;  %s1252_s7 = inlined_call_operand.hbm [shape: bf16[16,128], index: 7, kind: output, shape index: {}]  }
   0x1   :  { %v896_v0 = vld [vmem:[%s1246_s1 + $0x38] sm:$0xff]  ;;  %v895_v4 = vld [vmem:[%s1246_s1 + $0x30] sm:$0xff]  ;;  %v894_v8 = vld [vmem:[%s1246_s1 + $0x28] sm:$0xff] }
   0x2   :  { %v904_v1 = vld [vmem:[%s1246_s1 + $0x78] sm:$0xff]  ;;  %449 = vmatpush.bf16.msra.mxu0 %v896_v0  ;;  %v903_v5 = vld [vmem:[%s1246_s1 + $0x70] sm:$0xff]  ;;  %v902_v9 = vld [vmem:[%s1246_s1 + $0x68] sm:$0xff] }
   0x3   :  { %v912_v2 = vld [vmem:[%s1246_s1 + $0xb8] sm:$0xff]  ;;  %463 = vmatpush.bf16.msra.mxu1 %v904_v1  ;;  %v911_v6 = vld [vmem:[%s1246_s1 + $0xb0] sm:$0xff]  ;;  %v910_v10 = vld [vmem:[%s1246_s1 + $0xa8] sm:$0xff] }
   0x4   :  { %v920_v3 = vld [vmem:[%s1246_s1 + $0xf8] sm:$0xff]  ;;  %477 = vmatpush.bf16.msra.mxu2 %v912_v2  ;;  %v919_v7 = vld [vmem:[%s1246_s1 + $0xf0] sm:$0xff]  ;;  %v918_v11 = vld [vmem:[%s1246_s1 + $0xe8] sm:$0xff] }
   0x5   :  { %491 = vmatpush.bf16.msra.mxu3 %v920_v3  ;;  %v893_v12 = vld [vmem:[%s1246_s1 + $0x20] sm:$0xff]  ;;  %v892_v16 = vld [vmem:[%s1246_s1 + $0x18] sm:$0xff]  ;;  %v891_v20 = vld [vmem:[%s1246_s1 + $0x10] sm:$0xff] }
   0x6   :  { %450 = vmatpush.bf16.msra.mxu0 %v895_v4  ;;  %v901_v13 = vld [vmem:[%s1246_s1 + $0x60] sm:$0xff]  ;;  %v900_v17 = vld [vmem:[%s1246_s1 + $0x58] sm:$0xff]  ;;  %v899_v21 = vld [vmem:[%s1246_s1 + $0x50] sm:$0xff] }
   0x7   :  { %464 = vmatpush.bf16.msra.mxu1 %v903_v5  ;;  %v909_v14 = vld [vmem:[%s1246_s1 + $0xa0] sm:$0xff]  ;;  %v908_v18 = vld [vmem:[%s1246_s1 + $0x98] sm:$0xff]  ;;  %v907_v22 = vld [vmem:[%s1246_s1 + $0x90] sm:$0xff] }
   0x8   :  { %478 = vmatpush.bf16.msra.mxu2 %v911_v6  ;;  %v917_v15 = vld [vmem:[%s1246_s1 + $0xe0] sm:$0xff]  ;;  %v916_v19 = vld [vmem:[%s1246_s1 + $0xd8] sm:$0xff]  ;;  %v915_v23 = vld [vmem:[%s1246_s1 + $0xd0] sm:$0xff] }
   0x9   :  { %492 = vmatpush.bf16.msra.mxu3 %v919_v7 }
   0xa   :  { %451 = vmatpush.bf16.msra.mxu0 %v894_v8 }
   0xb   :  { %465 = vmatpush.bf16.msra.mxu1 %v902_v9 }
   0xc   :  { %479 = vmatpush.bf16.msra.mxu2 %v910_v10 }
   0xd   :  { %493 = vmatpush.bf16.msra.mxu3 %v918_v11 }
   0xe   :  { %452 = vmatpush.bf16.msra.mxu0 %v893_v12 }
   0xf   :  { %466 = vmatpush.bf16.msra.mxu1 %v901_v13 }
  0x10   :  { %480 = vmatpush.bf16.msra.mxu2 %v909_v14 }
  0x11   :  { %494 = vmatpush.bf16.msra.mxu3 %v917_v15 }
  0x12   :  { %453 = vmatpush.bf16.msra.mxu0 %v892_v16 }
  0x13   :  { %467 = vmatpush.bf16.msra.mxu1 %v900_v17 }
  0x14   :  { %481 = vmatpush.bf16.msra.mxu2 %v908_v18 }
  0x15   :  { %495 = vmatpush.bf16.msra.mxu3 %v916_v19 }
  0x16   :  { %12 = vsyncpa [#allocation3], 0  ;;  %454 = vmatpush.bf16.msra.mxu0 %v891_v20  ;;  %v890_v24 = vld [vmem:[%s1246_s1 + $0x8] sm:$0xff]  ;;  %v889_v28 = vld [vmem:[%s1246_s1] sm:$0xff]  ;;  %vm445_vm0 = vcmask 130048   ;;  %vm586_vm1 = vcmask 1040384  }
  0x17   :  { %468 = vmatpush.bf16.msra.mxu1 %v899_v21  ;;  %v898_v25 = vld [vmem:[%s1246_s1 + $0x48] sm:$0xff]  ;;  %v897_v29 = vld [vmem:[%s1246_s1 + $0x40] sm:$0xff]  ;;  %v35_v31 = vld [vmem:[%s1245_s0 + $0x38] sm:$0xff]  ;;  %vm630_vm2 = vcmask 1046528   ;;  %vm582_vm3 = vcmask 408576   ;;  %vm626_vm4 = vcmask 244736  }
  0x18   :  { %482 = vmatpush.bf16.msra.mxu2 %v907_v22  ;;  %v906_v26 = vld [vmem:[%s1246_s1 + $0x88] sm:$0xff]  ;;  %v28_v30 = vld [vmem:[%s1245_s0] sm:$0xff]  ;;  %v928_v34 = vld [vmem:[%s1246_s1 + $0x138] sm:$0xff]  ;;  %s658_s8 = sshll.u32 %s1252_s7, 4  ;;  %s982_s9 = smov 4   ;;  %s659_s8 = int_to_ptr.hbm [resolvable:$true] %s658_s8 }
  0x19   :  { %496 = vmatpush.bf16.msra.mxu3 %v915_v23  ;;  %v914_v27 = vld [vmem:[%s1246_s1 + $0xc8] sm:$0xff]  ;;  %v36_v33 = vld [vmem:[%s1245_s0 + $0x40] sm:$0xff]  ;;  %v936_v35 = vld [vmem:[%s1246_s1 + $0x178] sm:$0xff]  ;;  %v42_v40 = vpack.c.bf16 %v35_v31, %v28_v30 }
  0x1a   :  { %455 = vmatpush.bf16.msra.mxu0 %v890_v24  ;;  %v29_v32 = vld [vmem:[%s1245_s0 + $0x8] sm:$0xff]  ;;  %v905_v36 = vld [vmem:[%s1246_s1 + $0x80] sm:$0xff]  ;;  %v30_v38 = vld [vmem:[%s1245_s0 + $0x10] sm:$0xff] }
  0x1b   :  { %469 = vmatpush.bf16.msra.mxu1 %v898_v25  ;;  %v913_v37 = vld [vmem:[%s1246_s1 + $0xc0] sm:$0xff]  ;;  %v37_v39 = vld [vmem:[%s1245_s0 + $0x48] sm:$0xff]  ;;  %v31_v41 = vld [vmem:[%s1245_s0 + $0x18] sm:$0xff]  ;;  %v43_v43 = vpack.c.bf16 %v36_v33, %v29_v32 }
  0x1c   :  { %483 = vmatpush.bf16.msra.mxu2 %v906_v26  ;;  %v38_v42 = vld [vmem:[%s1245_s0 + $0x50] sm:$0xff]  ;;  %v937_v44 = vld [vmem:[%s1246_s1 + $0x180] sm:$0xff]  ;;  %v44_v47 = vpack.c.bf16 %v37_v39, %v30_v38  ;;  %v926_v49 = vld [vmem:[%s1246_s1 + $0x128] sm:$0xff] }
  0x1d   :  { %497 = vmatpush.bf16.msra.mxu3 %v914_v27  ;;  %v927_v45 = vld [vmem:[%s1246_s1 + $0x130] sm:$0xff]  ;;  %v45_v48 = vpack.c.bf16 %v38_v42, %v31_v41  ;;  %v934_v50 = vld [vmem:[%s1246_s1 + $0x168] sm:$0xff]  ;;  %v925_v51 = vld [vmem:[%s1246_s1 + $0x120] sm:$0xff] }
  0x1e   :  { %456 = vmatpush.bf16.msra.mxu0 %v889_v28  ;;  %v935_v46 = vld [vmem:[%s1246_s1 + $0x170] sm:$0xff]  ;;  %v933_v52 = vld [vmem:[%s1246_s1 + $0x160] sm:$0xff]  ;;  %v924_v53 = vld [vmem:[%s1246_s1 + $0x118] sm:$0xff] }
  0x1f   :  { %470 = vmatpush.bf16.msra.mxu1 %v897_v29  ;;  %v932_v54 = vld [vmem:[%s1246_s1 + $0x158] sm:$0xff]  ;;  %v34_v55 = vld [vmem:[%s1245_s0 + $0x30] sm:$0xff]  ;;  %v41_v56 = vld [vmem:[%s1245_s0 + $0x68] sm:$0xff] }
  0x20   :  { %484 = vmatpush.bf16.msra.mxu2 %v905_v36  ;;  %v923_v57 = vld [vmem:[%s1246_s1 + $0x110] sm:$0xff]  ;;  %v48_v59 = vpack.c.bf16 %v41_v56, %v34_v55  ;;  %v922_v60 = vld [vmem:[%s1246_s1 + $0x108] sm:$0xff]  ;;  %v921_v62 = vld [vmem:[%s1246_s1 + $0x100] sm:$0xff] }
  0x21   :  { %498 = vmatpush.bf16.msra.mxu3 %v913_v37  ;;  %457 = vmatmul.bf16.vlgmr.msra.gmra.mxu0 %v42_v40  ;;  %v931_v58 = vld [vmem:[%s1246_s1 + $0x150] sm:$0xff]  ;;  %v930_v61 = vld [vmem:[%s1246_s1 + $0x148] sm:$0xff]  ;;  %v929_v63 = vld [vmem:[%s1246_s1 + $0x140] sm:$0xff] }
  0x22   :  { %505 = vmatpush.bf16.msrb.mxu0 %v928_v34  ;;  %471 = vmatmul.bf16.vlgmr.msra.gmra.mxu1 %v43_v43  ;;  %v32_v0 = vld [vmem:[%s1245_s0 + $0x20] sm:$0xff]  ;;  %v39_v1 = vld [vmem:[%s1245_s0 + $0x58] sm:$0xff]  ;;  %v33_v2 = vld [vmem:[%s1245_s0 + $0x28] sm:$0xff] }
  0x23   :  { %519 = vmatpush.bf16.msrb.mxu1 %v936_v35  ;;  %485 = vmatmul.bf16.vlgmr.msra.gmra.mxu2 %v44_v47  ;;  %v40_v3 = vld [vmem:[%s1245_s0 + $0x60] sm:$0xff]  ;;  %v46_v4 = vpack.c.bf16 %v39_v1, %v32_v0  ;;  %v556_v6 = vld [vmem:[%s1248_s3 + $0x18] sm:$0x1]  ;;  %v940_v10 = vld [vmem:[%s1248_s3 + $0x10] sm:$0xff] }
  0x24   :  { %540 = vmatpush.bf16.msrb.mxu2 %v937_v44  ;;  %499 = vmatmul.bf16.vlgmr.msra.gmra.mxu3 %v45_v48  ;;  %v47_v5 = vpack.c.bf16 %v40_v3, %v33_v2  ;;  %v574_v7 = vunpack.c.l.b16 %v556_v6  ;;  %v939_v11 = vld [vmem:[%s1248_s3 + $0x8] sm:$0xff]  ;;  %v938_v15 = vld [vmem:[%s1248_s3] sm:$0xff] }
  0x25   :  { %v951_v16 = vld [vmem:[%s1247_s2] ss:$0 sm:$0xff]  ;;  %v886_v17 = vld [vmem:[%s1250_s5 + $0x8] sm:$0xf]  ;;  %v942_v18 = vld [vmem:[%s1250_s5 + $0x8] sm:$0x70] }
  0x26   :  { %506 = vmatpush.bf16.msrb.mxu0 %v927_v45  ;;  %v578_v8 = vpack.c.b16 %v574_v7, %v574_v7  ;;  %v887_v19 = vor.u32 %v942_v18, %v886_v17 }
  0x27   :  { %520 = vmatpush.bf16.msrb.mxu1 %v935_v46 }
  0x28   :  { %v588_v9 = vsel %vm586_vm1, %v578_v8, 0  ;;  %v632_v21 = vsel %vm630_vm2, %v887_v19, 0 }
  0x29   :  { %594 = vmatpush.bf16.msrb.mxu3 %v588_v9  ;;  %640 = vmatpush.bf16.msra.mxu2 %v632_v21 }
  0x2a   :  { %507 = vmatpush.bf16.msrb.mxu0 %v926_v49  ;;  %v941_v49 = vld [vmem:[%s1250_s5] sm:$0xff]  ;;  %s980_s5 = smov [#allocation2]  }
  0x2b   :  { %521 = vmatpush.bf16.msrb.mxu1 %v934_v50  ;;  %s656_s28 = sshll.u32 %s980_s5, 4  ;;  %s657_s28 = int_to_ptr.vmem [resolvable:$true] %s656_s28 }
  0x2d   :  { %595 = vmatpush.bf16.msrb.mxu3 %v940_v10  ;;  %641 = vmatpush.bf16.msra.mxu2 %v941_v49 }
  0x2e   :  { %508 = vmatpush.bf16.msrb.mxu0 %v925_v51  ;;  %v952_v51 = vld [vmem:[%s1249_s4] ss:$0 sm:$0xff]  ;;  %s981_s4 = smov 64  }
  0x2f   :  { %522 = vmatpush.bf16.msrb.mxu1 %v933_v52 }
  0x31   :  { %596 = vmatpush.bf16.msrb.mxu3 %v939_v11 }
  0x32   :  { %509 = vmatpush.bf16.msrb.mxu0 %v924_v53 }
  0x33   :  { %523 = vmatpush.bf16.msrb.mxu1 %v932_v54  ;;  %866 = vmatmul.msk.bf16.vlgmr.msrb.gmra.mxu2 %vm445_vm0, %v48_v59  ;;  %v953_v59 = vld [vmem:[%s1251_s6] ss:$0 sm:$0xff] }
  0x35   :  { %597 = vmatpush.bf16.msrb.mxu3 %v938_v15 }
  0x36   :  { %510 = vmatpush.bf16.msrb.mxu0 %v923_v57 }
  0x37   :  { %524 = vmatpush.bf16.msrb.mxu1 %v931_v58 }
  0x3a   :  { %511 = vmatpush.bf16.msrb.mxu0 %v922_v60 }
  0x3b   :  { %525 = vmatpush.bf16.msrb.mxu1 %v930_v61 }
  0x3e   :  { %512 = vmatpush.bf16.msrb.mxu0 %v921_v62 }
  0x3f   :  { %526 = vmatpush.bf16.msrb.mxu1 %v929_v63 }
  0x41   :  { %513 = vmatmul.bf16.vlgmr.msrb.gmra.mxu0 %v46_v4 }
  0x42   :  { %527 = vmatmul.bf16.vlgmr.msrb.gmra.mxu1 %v47_v5 }
  0x9e   :  { %v458_v12 = vpop.f32.mrf.mxu0 }
  0x9f   :  { %v472_v13 = vpop.f32.mrf.mxu1  ;;  %v459_v20 = vadd.f32 %v951_v16, %v458_v12 }
  0xa1   :  { %v473_v25 = vadd.f32 %v472_v13, %v459_v20 }
  0xa6   :  { %v486_v14 = vpop.f32.mrf.mxu2  ;;  %v460_v22 = vpop.f32.mrf.mxu0 }
  0xa7   :  { %v474_v23 = vpop.f32.mrf.mxu1  ;;  %v500_v26 = vpop.f32.mrf.mxu3  ;;  %v461_v27 = vadd.f32 %v951_v16, %v460_v22  ;;  %v487_v28 = vadd.f32 %v486_v14, %v473_v25 }
  0xa9   :  { %v475_v29 = vadd.f32 %v474_v23, %v461_v27  ;;  %v501_v32 = vadd.f32 %v500_v26, %v487_v28 }
  0xae   :  { %v488_v24 = vpop.f32.mrf.mxu2 }
  0xaf   :  { %v489_v34 = vadd.f32 %v488_v24, %v475_v29  ;;  %v502_v36 = vpop.f32.mrf.mxu3 }
  0xb1   :  { %v503_v37 = vadd.f32 %v502_v36, %v489_v34 }
  0xb6   :  { %v542_v33 = vpop.f32.mrf.mxu2 }
  0xbe   :  { %v514_v30 = vpop.f32.mrf.mxu0  ;;  %v544_v44 = vpop.f32.mrf.mxu2 }
  0xbf   :  { %v528_v31 = vpop.f32.mrf.mxu1  ;;  %v515_v35 = vadd.f32 %v514_v30, %v501_v32 }
  0xc1   :  { %v529_v38 = vadd.f32 %v528_v31, %v515_v35 }
  0xc3   :  { %v543_v42 = vadd.f32 %v542_v33, %v529_v38 }
  0xc5   :  { %v547_v46 = vmax.f32 %v543_v42, 0.0 }
  0xc6   :  { %v516_v39 = vpop.f32.mrf.mxu0 }
  0xc7   :  { %v517_v40 = vadd.f32 %v516_v39, %v503_v37  ;;  %v530_v41 = vpop.f32.mrf.mxu1 }
  0xc9   :  { %v531_v43 = vadd.f32 %v530_v41, %v517_v40 }
  0xcb   :  { %v545_v45 = vadd.f32 %v544_v44, %v531_v43 }
  0xcd   :  { %v548_v47 = vmax.f32 %v545_v45, 0.0 }
  0xcf   :  { %v549_v48 = vpack.c.bf16 %v548_v47, %v547_v46 }
  0xd1   :  { %879 = vmatmul.msk.bf16.vlgmr.msrb.gmra.mxu3 %vm582_vm3, %v549_v48 }
 0x154   :  { %v599_v50 = vpop.f32.mrf.mxu3 }
 0x155   :  { %v600_v52 = vadd.f32 %v952_v51, %v599_v50 }
 0x157   :  { %v604_v55 = vmax.f32 %v600_v52, 0.0 }
 0x15c   :  { %v601_v53 = vpop.f32.mrf.mxu3 }
 0x15d   :  { %v602_v54 = vadd.f32 %v952_v51, %v601_v53 }
 0x15f   :  { %v605_v56 = vmax.f32 %v602_v54, 0.0 }
 0x161   :  { %v606_v57 = vpack.c.bf16 %v605_v56, %v604_v55 }
 0x163   :  { %888 = vmatmul.msk.bf16.vlgmr.msra.gmra.mxu2 %vm626_vm4, %v606_v57 }
 0x1e6   :  { %v643_v58 = vpop.f32.mrf.mxu2 }
 0x1e7   :  { %v644_v61 = vadd.f32 %v953_v59, %v643_v58 }
 0x1ee   :  { %v645_v60 = vpop.f32.mrf.mxu2 }
 0x1ef   :  { %v646_v62 = vadd.f32 %v953_v59, %v645_v60 }
 0x1f1   :  { %v946_v63 = vpack.c.bf16 %v646_v62, %v644_v61 }
 0x1f3   :  { %947 = vst [vmem:[#allocation2] sm:$0xff] %v946_v63  }
 0x1f4   :  { %664 = dma.vmem_to_hbm [thread:$0]  %s657_s28, 128, %s659_s8, [#allocation3], %s981_s4, %s981_s4, %s982_s9  }
 0x1f5   :  { %978 = dma.done.wait [#allocation3], 128  }
 0x1f6   :  { %979 = vsyncadd [#allocation3], 4294967168 }
 0x1f7   :  { %669 = vsyncpa [#allocation3], 1 }

</bundles_post_ra>
